<compile_context>
chip_gen: v6e
topology: v6e:2x2x1
jax: 0.10.0
libtpu: 0.0.40
codegen_flags: <defaults>
</compile_context>

<pallas_src>
import jax
import jax.numpy as jnp
from jax.experimental import pallas as pl
from jax.experimental.pallas import tpu as pltpu


# --------------------------------------------------------------------------- #
# Kernel 1: input-gate projections (both directions), row tiled over B*T rows #
# --------------------------------------------------------------------------- #
def in_proj_kernel(x_ref, wf_ref, bf_ref, wr_ref, br_ref, xpf_ref, xpr_ref):
    x = x_ref[...].astype(jnp.float32)                       # (tR, E)
    xpf = jnp.dot(x, wf_ref[...].astype(jnp.float32),
                  preferred_element_type=jnp.float32) + bf_ref[...].astype(jnp.float32)
    xpr = jnp.dot(x, wr_ref[...].astype(jnp.float32),
                  preferred_element_type=jnp.float32) + br_ref[...].astype(jnp.float32)
    xpf_ref[...] = xpf.astype(xpf_ref.dtype)                 # (tR, 3H)
    xpr_ref[...] = xpr.astype(xpr_ref.dtype)


# --------------------------------------------------------------------------- #
# Kernel 2: bi-directional GRU scan (serial over time tiles)                   #
# --------------------------------------------------------------------------- #
def gru_scan_kernel(xpf_ref, xpr_ref, mf_ref, mr_ref,
                    whhf_ref, bhhf_ref, whhr_ref, bhhr_ref, whhp_ref,
                    outf_ref, outr_ref, hid_ref,
                    hf_s, hr_s):
    i = pl.program_id(0)
    n_tiles = pl.num_programs(0)
    t_tile = xpf_ref.shape[0]
    H = hf_s.shape[-1]

    @pl.when(i == 0)
    def _():
        hf_s[...] = jnp.zeros_like(hf_s)
        hr_s[...] = jnp.zeros_like(hr_s)

    # Recurrent weights stay resident; load once per grid step (outside time loop).
    whhf = whhf_ref[...].astype(jnp.float32)
    bhhf = bhhf_ref[...].astype(jnp.float32)
    whhr = whhr_ref[...].astype(jnp.float32)
    bhhr = bhhr_ref[...].astype(jnp.float32)

    def cell(xp, h, whh, bhh):
        gh = jnp.dot(h, whh, preferred_element_type=jnp.float32) + bhh   # (B, 3H)
        r = jax.nn.sigmoid(xp[:, :H] + gh[:, :H])
        z = jax.nn.sigmoid(xp[:, H:2 * H] + gh[:, H:2 * H])
        n = jnp.tanh(xp[:, 2 * H:] + r * gh[:, 2 * H:])
        return (1.0 - z) * n + z * h

    def body(j, carry):
        hf, hr = carry
        xpf = xpf_ref[j].astype(jnp.float32)     # (B, 3H)
        xpr = xpr_ref[j].astype(jnp.float32)
        mf = mf_ref[j].astype(jnp.float32)       # (B, 1)
        mr = mr_ref[j].astype(jnp.float32)

        hf_new = cell(xpf, hf, whhf, bhhf)
        hr_new = cell(xpr, hr, whhr, bhhr)

        hf = mf * hf_new + (1.0 - mf) * hf       # freeze state past seq length
        hr = mr * hr_new + (1.0 - mr) * hr

        outf_ref[j] = (mf * hf_new).astype(outf_ref.dtype)   # zeros past length
        outr_ref[j] = (mr * hr_new).astype(outr_ref.dtype)
        return hf, hr

    hf, hr = jax.lax.fori_loop(0, t_tile, body, (hf_s[...], hr_s[...]), unroll=True)
    hf_s[...] = hf
    hr_s[...] = hr

    @pl.when(i == n_tiles - 1)
    def _():
        # hidden = w_h_h_p(concat(h_fwd_final, h_bwd_final))   (fused here)
        hcat = jnp.concatenate([hf, hr], axis=-1)              # (B, 2H)
        hid_ref[...] = jnp.dot(hcat, whhp_ref[...].astype(jnp.float32),
                               preferred_element_type=jnp.float32).astype(hid_ref.dtype)


# --------------------------------------------------------------------------- #
# Kernel 3: fused w_h_o_p + W_h_f_p projections, row tiled over B*T_out rows   #
# --------------------------------------------------------------------------- #
def out_proj_kernel(of_ref, ob_ref, wof_ref, wob_ref, wf_ref, eo_ref, ef_ref):
    of = of_ref[...].astype(jnp.float32)                      # (tR, H)
    ob = ob_ref[...].astype(jnp.float32)
    eo = (jnp.dot(of, wof_ref[...].astype(jnp.float32), preferred_element_type=jnp.float32)
          + jnp.dot(ob, wob_ref[...].astype(jnp.float32), preferred_element_type=jnp.float32))
    ef = jnp.dot(eo, wf_ref[...].astype(jnp.float32), preferred_element_type=jnp.float32)
    eo_ref[...] = eo.astype(eo_ref.dtype)
    ef_ref[...] = ef.astype(ef_ref.dtype)


# --------------------------------------------------------------------------- #
# Wrapper                                                                      #
# --------------------------------------------------------------------------- #
def _round_up(x, m):
    return ((x + m - 1) // m) * m


def encoder_p_forward(input_embed, seq_lens, params):
    input_embed = jnp.asarray(input_embed, jnp.float32)
    B, T, E = input_embed.shape
    H = params["Whh_f"].shape[1]
    lens = jnp.asarray(seq_lens, jnp.int32)
    # pad_packed_sequence trims the time axis to max(seq_lens)
    T_out = int(max(int(l) for l in list(seq_lens)))

    # ---------------- 1) input-gate projections (row tiled, parallel) ---------------- #
    R = B * T
    tR = 256 if R >= 256 else _round_up(R, 8)
    Rp = _round_up(R, tR)
    x_rows = input_embed.reshape(R, E)
    if Rp != R:
        x_rows = jnp.pad(x_rows, ((0, Rp - R), (0, 0)))

    wih_f_t = params["Wih_f"].T                  # (E, 3H)
    wih_r_t = params["Wih_r"].T
    b_ih_f = params["b_ih_f"].reshape(1, 3 * H)
    b_ih_r = params["b_ih_r"].reshape(1, 3 * H)

    xp_f_rows, xp_r_rows = pl.pallas_call(
        in_proj_kernel,
        out_shape=(jax.ShapeDtypeStruct((Rp, 3 * H), jnp.float32),
                   jax.ShapeDtypeStruct((Rp, 3 * H), jnp.float32)),
        grid=(Rp // tR,),
        in_specs=[
            pl.BlockSpec((tR, E), lambda i: (i, 0)),
            pl.BlockSpec((E, 3 * H), lambda i: (0, 0)),
            pl.BlockSpec((1, 3 * H), lambda i: (0, 0)),
            pl.BlockSpec((E, 3 * H), lambda i: (0, 0)),
            pl.BlockSpec((1, 3 * H), lambda i: (0, 0)),
        ],
        out_specs=(pl.BlockSpec((tR, 3 * H), lambda i: (i, 0)),
                   pl.BlockSpec((tR, 3 * H), lambda i: (i, 0))),
        compiler_params=pltpu.CompilerParams(dimension_semantics=("parallel",)),
    )(x_rows, wih_f_t, b_ih_f, wih_r_t, b_ih_r)

    # time-major streams; backward direction consumes time-reversed input
    xp_f = xp_f_rows[:R].reshape(B, T, 3 * H).transpose(1, 0, 2)        # (T, B, 3H)
    xp_r = xp_r_rows[:R].reshape(B, T, 3 * H).transpose(1, 0, 2)[::-1]  # reversed time

    # per-step validity masks (time-major).  reversed position t maps to original
    # time T-1-t, which is valid iff t >= T - len.
    t_idx = jnp.arange(T)[:, None]
    mask_f = (t_idx < lens[None, :]).astype(jnp.float32)[:, :, None]         # (T, B, 1)
    mask_r = (t_idx >= (T - lens)[None, :]).astype(jnp.float32)[:, :, None]  # (T, B, 1)

    # pad time axis to a multiple of the time tile; padded steps are fully masked
    T_TILE = T if T <= 16 else 16
    Tp = _round_up(T, T_TILE)
    if Tp != T:
        pad = ((0, Tp - T), (0, 0), (0, 0))
        xp_f, xp_r = jnp.pad(xp_f, pad), jnp.pad(xp_r, pad)
        mask_f, mask_r = jnp.pad(mask_f, pad), jnp.pad(mask_r, pad)

    whh_f_t = params["Whh_f"].T                  # (H, 3H)
    whh_r_t = params["Whh_r"].T
    b_hh_f = params["b_hh_f"].reshape(1, 3 * H)
    b_hh_r = params["b_hh_r"].reshape(1, 3 * H)
    whhp_t = params["W_hh"].T                    # (2H, H)

    out_f_tm, out_r_tm, hidden = pl.pallas_call(
        gru_scan_kernel,
        out_shape=(jax.ShapeDtypeStruct((Tp, B, H), jnp.float32),
                   jax.ShapeDtypeStruct((Tp, B, H), jnp.float32),
                   jax.ShapeDtypeStruct((B, H), jnp.float32)),
        grid=(Tp // T_TILE,),
        in_specs=[
            pl.BlockSpec((T_TILE, B, 3 * H), lambda i: (i, 0, 0)),
            pl.BlockSpec((T_TILE, B, 3 * H), lambda i: (i, 0, 0)),
            pl.BlockSpec((T_TILE, B, 1), lambda i: (i, 0, 0)),
            pl.BlockSpec((T_TILE, B, 1), lambda i: (i, 0, 0)),
            pl.BlockSpec((H, 3 * H), lambda i: (0, 0)),
            pl.BlockSpec((1, 3 * H), lambda i: (0, 0)),
            pl.BlockSpec((H, 3 * H), lambda i: (0, 0)),
            pl.BlockSpec((1, 3 * H), lambda i: (0, 0)),
            pl.BlockSpec((2 * H, H), lambda i: (0, 0)),
        ],
        out_specs=(pl.BlockSpec((T_TILE, B, H), lambda i: (i, 0, 0)),
                   pl.BlockSpec((T_TILE, B, H), lambda i: (i, 0, 0)),
                   pl.BlockSpec((B, H), lambda i: (0, 0))),
        scratch_shapes=[pltpu.VMEM((B, H), jnp.float32),
                        pltpu.VMEM((B, H), jnp.float32)],
        compiler_params=pltpu.CompilerParams(dimension_semantics=("arbitrary",)),
    )(xp_f, xp_r, mask_f, mask_r, whh_f_t, b_hh_f, whh_r_t, b_hh_r, whhp_t)

    # back to batch-major; un-reverse backward stream; trim to packed length
    out_f = out_f_tm[:T].transpose(1, 0, 2)[:, :T_out]            # (B, T_out, H)
    out_r = out_r_tm[:T][::-1].transpose(1, 0, 2)[:, :T_out]      # (B, T_out, H)

    # ---------------- 3) fused output / feature projections (row tiled) ---------------- #
    R2 = B * T_out
    tR2 = 256 if R2 >= 256 else _round_up(R2, 8)
    R2p = _round_up(R2, tR2)
    of_rows = out_f.reshape(R2, H)
    ob_rows = out_r.reshape(R2, H)
    if R2p != R2:
        of_rows = jnp.pad(of_rows, ((0, R2p - R2), (0, 0)))
        ob_rows = jnp.pad(ob_rows, ((0, R2p - R2), (0, 0)))

    wo_f_t = params["W_o"][:, :H].T              # (H, H)  w_h_o_p split on 2H input
    wo_b_t = params["W_o"][:, H:].T              # (H, H)
    wf_t = params["W_f"].T                       # (H, H)

    eo_rows, ef_rows = pl.pallas_call(
        out_proj_kernel,
        out_shape=(jax.ShapeDtypeStruct((R2p, H), jnp.float32),
                   jax.ShapeDtypeStruct((R2p, H), jnp.float32)),
        grid=(R2p // tR2,),
        in_specs=[
            pl.BlockSpec((tR2, H), lambda i: (i, 0)),
            pl.BlockSpec((tR2, H), lambda i: (i, 0)),
            pl.BlockSpec((H, H), lambda i: (0, 0)),
            pl.BlockSpec((H, H), lambda i: (0, 0)),
            pl.BlockSpec((H, H), lambda i: (0, 0)),
        ],
        out_specs=(pl.BlockSpec((tR2, H), lambda i: (i, 0)),
                   pl.BlockSpec((tR2, H), lambda i: (i, 0))),
        compiler_params=pltpu.CompilerParams(dimension_semantics=("parallel",)),
    )(of_rows, ob_rows, wo_f_t, wo_b_t, wf_t)

    encoder_outputs = eo_rows[:R2].reshape(B, T_out, H)
    encoder_feature = ef_rows[:R2]               # (B*T_out, H)
    hidden = hidden[None]                        # (1, B, H)
    return encoder_outputs, encoder_feature, hidden


# --------------------------------------------------------------------------- #
# Pure-JAX reference (masked packed bi-GRU + projections)                      #
# --------------------------------------------------------------------------- #
def encoder_p_ref(input_embed, seq_lens, params):
    input_embed = jnp.asarray(input_embed, jnp.float32)
    B, T, E = input_embed.shape
    H = params["Whh_f"].shape[1]
    lens = jnp.asarray(seq_lens, jnp.int32)
    T_out = int(max(int(l) for l in list(seq_lens)))

    def cell(x_t, h, wih, whh, b_ih, b_hh):
        gx = x_t @ wih.T + b_ih
        gh = h @ whh.T + b_hh
        r = jax.nn.sigmoid(gx[:, :H] + gh[:, :H])
        z = jax.nn.sigmoid(gx[:, H:2 * H] + gh[:, H:2 * H])
        n = jnp.tanh(gx[:, 2 * H:] + r * gh[:, 2 * H:])
        return (1.0 - z) * n + z * h

    def run_dir(wih, whh, b_ih, b_hh, reverse):
        h = jnp.zeros((B, H), jnp.float32)
        outs = [None] * T
        order = range(T - 1, -1, -1) if reverse else range(T)
        for t in order:
            m = (t < lens).astype(jnp.float32)[:, None]
            h_new = cell(input_embed[:, t, :], h, wih, whh, b_ih, b_hh)
            h = m * h_new + (1.0 - m) * h
            outs[t] = m * h_new
        return jnp.stack(outs, axis=1), h

    out_f, h_f = run_dir(params["Wih_f"], params["Whh_f"], params["b_ih_f"], params["b_hh_f"], False)
    out_r, h_r = run_dir(params["Wih_r"], params["Whh_r"], params["b_ih_r"], params["b_hh_r"], True)

    enc2h = jnp.concatenate([out_f, out_r], axis=-1)[:, :T_out]
    encoder_outputs = enc2h @ params["W_o"].T
    hidden = (jnp.concatenate([h_f, h_r], axis=-1) @ params["W_hh"].T)[None]
    encoder_feature = encoder_outputs.reshape(-1, H) @ params["W_f"].T
    return encoder_outputs, encoder_feature, hidden


if __name__ == "__main__":
    B, T, E, H = 2, 8, 16, 32          # batch, seq, emb_dim, hidden_dim

    key = jax.random.PRNGKey(0)
    ks = jax.random.split(key, 12)
    u = lambda k, shape: jax.random.uniform(k, shape, jnp.float32, -0.1, 0.1)

    params = {
        "Wih_f": u(ks[0], (3 * H, E)),  "Whh_f": u(ks[1], (3 * H, H)),
        "b_ih_f": u(ks[2], (3 * H,)),   "b_hh_f": u(ks[3], (3 * H,)),
        "Wih_r": u(ks[4], (3 * H, E)),  "Whh_r": u(ks[5], (3 * H, H)),
        "b_ih_r": u(ks[6], (3 * H,)),   "b_hh_r": u(ks[7], (3 * H,)),
        "W_o":  u(ks[8], (H, 2 * H)),   # w_h_o_p  (no bias)
        "W_hh": u(ks[9], (H, 2 * H)),   # w_h_h_p  (no bias)
        "W_f":  u(ks[10], (H, H)),      # W_h_f_p  (no bias)
    }
    input_embed = jax.random.normal(ks[11], (B, T, E), jnp.float32)
    seq_lens = [8, 5]

    enc_out, enc_feat, hidden = encoder_p_forward(input_embed, seq_lens, params)
    jax.block_until_ready((enc_out, enc_feat, hidden))

    with jax.default_matmul_precision("float32"):
        ref_out, ref_feat, ref_hid = encoder_p_ref(input_embed, seq_lens, params)

    T_out = max(seq_lens)
    assert enc_out.shape == (B, T_out, H)
    assert enc_feat.shape == (B * T_out, H)
    assert hidden.shape == (1, B, H)
    assert jnp.allclose(enc_out, ref_out, atol=1e-4, rtol=1e-4)
    assert jnp.allclose(enc_feat, ref_feat, atol=1e-4, rtol=1e-4)
    assert jnp.allclose(hidden, ref_hid, atol=1e-4, rtol=1e-4)

    print("KERNEL_OK")
</pallas_src>

<mosaic_0001>
module attributes {stable_mosaic.version = 11 : i64} {
  func.func @in_proj_kernel(%arg0: i32, %arg1: memref<16x16xf32, #tpu.memory_space<vmem>>, %arg2: memref<16x96xf32, #tpu.memory_space<vmem>>, %arg3: memref<1x96xf32, #tpu.memory_space<vmem>>, %arg4: memref<16x96xf32, #tpu.memory_space<vmem>>, %arg5: memref<1x96xf32, #tpu.memory_space<vmem>>, %arg6: memref<16x96xf32, #tpu.memory_space<vmem>>, %arg7: memref<16x96xf32, #tpu.memory_space<vmem>>) attributes {dimension_semantics = [#tpu.dimension_semantics<parallel>], iteration_bounds = array<i64: 1>, scalar_prefetch = 0 : i64, scratch_operands = 0 : i64, tpu.core_type = #tpu.core_type<tc>, window_params = [{transform_indices = @transform_0, window_bounds = array<i64: 16, 16>}, {pipeline_mode = #tpu.pipeline_mode<synchronous>, transform_indices = @transform_1, window_bounds = array<i64: 16, 96>}, {pipeline_mode = #tpu.pipeline_mode<synchronous>, transform_indices = @transform_2, window_bounds = array<i64: 1, 96>}, {pipeline_mode = #tpu.pipeline_mode<synchronous>, transform_indices = @transform_3, window_bounds = array<i64: 16, 96>}, {pipeline_mode = #tpu.pipeline_mode<synchronous>, transform_indices = @transform_4, window_bounds = array<i64: 1, 96>}, {transform_indices = @transform_5, window_bounds = array<i64: 16, 96>}, {transform_indices = @transform_6, window_bounds = array<i64: 16, 96>}]} {
    %c0 = arith.constant 0 : index
    %c0_0 = arith.constant 0 : index
    %0 = vector.load %arg1[%c0, %c0_0] : memref<16x16xf32, #tpu.memory_space<vmem>>, vector<16x16xf32>
    %c0_1 = arith.constant 0 : index
    %c0_2 = arith.constant 0 : index
    %1 = vector.load %arg2[%c0_1, %c0_2] : memref<16x96xf32, #tpu.memory_space<vmem>>, vector<16x96xf32>
    %cst = arith.constant dense<0.000000e+00> : vector<16x96xf32>
    %2 = tpu.matmul %0, %1, %cst {dimension_numbers = #tpu.dot_dimension_numbers<[1], [0], [0], [1], [0, 0, 1, 1], [], []>} : vector<16x16xf32>, vector<16x96xf32>, vector<16x96xf32> -> vector<16x96xf32>
    %c0_3 = arith.constant 0 : index
    %c0_4 = arith.constant 0 : index
    %3 = vector.load %arg3[%c0_3, %c0_4] : memref<1x96xf32, #tpu.memory_space<vmem>>, vector<1x96xf32>
    %4 = vector.broadcast %3 : vector<1x96xf32> to vector<16x96xf32>
    %5 = arith.addf %2, %4 : vector<16x96xf32>
    %c0_5 = arith.constant 0 : index
    %c0_6 = arith.constant 0 : index
    %6 = vector.load %arg4[%c0_5, %c0_6] : memref<16x96xf32, #tpu.memory_space<vmem>>, vector<16x96xf32>
    %cst_7 = arith.constant dense<0.000000e+00> : vector<16x96xf32>
    %7 = tpu.matmul %0, %6, %cst_7 {dimension_numbers = #tpu.dot_dimension_numbers<[1], [0], [0], [1], [0, 0, 1, 1], [], []>} : vector<16x16xf32>, vector<16x96xf32>, vector<16x96xf32> -> vector<16x96xf32>
    %c0_8 = arith.constant 0 : index
    %c0_9 = arith.constant 0 : index
    %8 = vector.load %arg5[%c0_8, %c0_9] : memref<1x96xf32, #tpu.memory_space<vmem>>, vector<1x96xf32>
    %9 = vector.broadcast %8 : vector<1x96xf32> to vector<16x96xf32>
    %10 = arith.addf %7, %9 : vector<16x96xf32>
    %c0_10 = arith.constant 0 : index
    %c0_11 = arith.constant 0 : index
    %11 = vector.load %arg6[%c0_10, %c0_11] : memref<16x96xf32, #tpu.memory_space<vmem>>, vector<16x96xf32>
    tpu.vector_store %arg6[%c0_10, %c0_11], %5 {strides = array<i32>} : memref<16x96xf32, #tpu.memory_space<vmem>>, vector<16x96xf32>,
    %c0_12 = arith.constant 0 : index
    %c0_13 = arith.constant 0 : index
    %12 = vector.load %arg7[%c0_12, %c0_13] : memref<16x96xf32, #tpu.memory_space<vmem>>, vector<16x96xf32>
    tpu.vector_store %arg7[%c0_12, %c0_13], %10 {strides = array<i32>} : memref<16x96xf32, #tpu.memory_space<vmem>>, vector<16x96xf32>,
    return
  }
  func.func @transform_0(%arg0: i32) -> (i32, i32) {
    %c0_i32 = arith.constant 0 : i32
    %c0_i32_0 = arith.constant 0 : i32
    return %arg0, %c0_i32 : i32, i32
  }
  func.func @transform_1(%arg0: i32) -> (i32, i32) {
    %c0_i32 = arith.constant 0 : i32
    %c0_i32_0 = arith.constant 0 : i32
    %c0_i32_1 = arith.constant 0 : i32
    return %c0_i32, %c0_i32_0 : i32, i32
  }
  func.func @transform_2(%arg0: i32) -> (i32, i32) {
    %c0_i32 = arith.constant 0 : i32
    %c0_i32_0 = arith.constant 0 : i32
    %c0_i32_1 = arith.constant 0 : i32
    return %c0_i32, %c0_i32_0 : i32, i32
  }
  func.func @transform_3(%arg0: i32) -> (i32, i32) {
    %c0_i32 = arith.constant 0 : i32
    %c0_i32_0 = arith.constant 0 : i32
    %c0_i32_1 = arith.constant 0 : i32
    return %c0_i32, %c0_i32_0 : i32, i32
  }
  func.func @transform_4(%arg0: i32) -> (i32, i32) {
    %c0_i32 = arith.constant 0 : i32
    %c0_i32_0 = arith.constant 0 : i32
    %c0_i32_1 = arith.constant 0 : i32
    return %c0_i32, %c0_i32_0 : i32, i32
  }
  func.func @transform_5(%arg0: i32) -> (i32, i32) {
    %c0_i32 = arith.constant 0 : i32
    %c0_i32_0 = arith.constant 0 : i32
    return %arg0, %c0_i32 : i32, i32
  }
  func.func @transform_6(%arg0: i32) -> (i32, i32) {
    %c0_i32 = arith.constant 0 : i32
    %c0_i32_0 = arith.constant 0 : i32
    return %arg0, %c0_i32 : i32, i32
  }
}

</mosaic_0001>

<bundles_post_ra>
// kernel: tpu_custom_call.1
= control target key start
LH: loop header
LB: loop body
LE: loop exit
PB: predicated region body
PF: predicated region fallthrough
CT: control target
= control target key end

     0   :  { %12 = vsyncpa [#allocation3], 0  ;;  %s506_s0 = inlined_call_operand.hbm [shape: f32[16,16], index: 0, kind: input, shape index: {}]   ;;  %s507_s1 = inlined_call_operand.hbm [shape: f32[16,96], index: 1, kind: input, shape index: {}]   ;;  %s508_s2 = inlined_call_operand.vmem [shape: f32[1,96], index: 2, kind: input, shape index: {}]   ;;  %s509_s3 = inlined_call_operand.hbm [shape: f32[16,96], index: 3, kind: input, shape index: {}]   ;;  %s510_s4 = inlined_call_operand.vmem [shape: f32[1,96], index: 4, kind: input, shape index: {}]   ;;  %s511_s5 = inlined_call_operand.hbm [shape: f32[16,96], index: 5, kind: output, shape index: {0}]   ;;  %s512_s6 = inlined_call_operand.hbm [shape: f32[16,96], index: 6, kind: output, shape index: {1}]  }
   0x1   :  { %13 = vsyncpa [#allocation6], 0 }
   0x2   :  { %14 = vsyncpa [#allocation4], 0 }
   0x3   :  { %15 = vsyncpa [#allocation10], 0  ;;  %s424_s21 = smov [#allocation5]   ;;  %s425_s23 = smov [#allocation2]  }
   0x4   :  { %s33_s22 = sshll.u32 %s424_s21, 4  ;;  %s21_s24 = sshll.u32 %s425_s23, 4  ;;  %s34_s22 = int_to_ptr.vmem [resolvable:$true] %s33_s22  ;;  %s22_s24 = int_to_ptr.vmem [resolvable:$true] %s21_s24 }
   0x5   :  { %s324_s25 = scalar_lea.vmem %s34_s22, 256  ;;  %p329_p1 = scmp.lt.s32.totalorder %s34_s22, %s34_s22 }
   0x6   :  { %p325_p0 = scmp.ne.s32.totalorder %s34_s22, %s324_s25  ;;  %p330_p2 = scmp.lt.s32.totalorder %s324_s25, %s324_s25 }
   0x8   :  { %p331_p3 = por %p330_p2, %p329_p1 }
   0xa   :  { %p332_p4 = pnand %p331_p3, %p325_p0 }
   0xc   :  { %335 = shalt.err (!%p332_p4)
}
   0xd   :  { %s426_s26 = smov 128   ;;  %s427_s27 = smov 8  }
   0xe   :  { %39 = dma.hbm_to_vmem [thread:$0]  %s507_s1, 256, %s34_s22, [#allocation6], %s426_s26, %s426_s26, %s427_s27  }
   0xf   :  { %s344_s30 = scalar_lea.vmem %s22_s24, 256  ;;  %p349_p6 = scmp.lt.s32.totalorder %s22_s24, %s22_s24 }
  0x10   :  { %p345_p5 = scmp.ne.s32.totalorder %s22_s24, %s344_s30  ;;  %p350_p7 = scmp.lt.s32.totalorder %s344_s30, %s344_s30 }
  0x12   :  { %p351_p8 = por %p350_p7, %p349_p6 }
  0x14   :  { %p352_p9 = pnand %p351_p8, %p345_p5 }
  0x16   :  { %355 = shalt.err (!%p352_p9)
}
  0x17   :  { %27 = dma.hbm_to_vmem [thread:$0]  %s506_s0, 256, %s22_s24, [#allocation3], %s426_s26, %s426_s26, %s427_s27  }
  0x18   :  { %s428_s9 = smov [#allocation7]  }
  0x19   :  { %s47_s10 = sshll.u32 %s428_s9, 4  ;;  %s48_s10 = int_to_ptr.vmem [resolvable:$true] %s47_s10 }
  0x1a   :  { %s364_s11 = scalar_lea.vmem %s48_s10, 256  ;;  %p369_p11 = scmp.lt.s32.totalorder %s48_s10, %s48_s10 }
  0x1b   :  { %p365_p10 = scmp.ne.s32.totalorder %s48_s10, %s364_s11  ;;  %p370_p12 = scmp.lt.s32.totalorder %s364_s11, %s364_s11 }
  0x1d   :  { %p371_p13 = por %p370_p12, %p369_p11 }
  0x1f   :  { %p372_p0 = pnand %p371_p13, %p365_p10 }
  0x21   :  { %375 = shalt.err (!%p372_p0)
}
  0x22   :  { %53 = dma.hbm_to_vmem [thread:$0]  %s509_s3, 256, %s48_s10, [#allocation6], %s426_s26, %s426_s26, %s427_s27  }
  0x23   :  { %416 = dma.done.wait [#allocation3], 256  }
  0x24   :  { %417 = vsyncadd [#allocation3], 4294967040 }
  0x25   :  { %418 = dma.done.wait [#allocation6], 512  }
  0x26   :  { %419 = vsyncadd [#allocation6], 4294966784  ;;  %v68_v0 = vld [vmem:[#allocation5 + $0x8] sm:$0xff]  ;;  %v159_v1 = vld [vmem:[#allocation7 + $0x8] sm:$0xff]  ;;  %vm76_vm0 = vcmask 130048   ;;  %vm242_vm1 = vcmask 785408  }
  0x27   :  { %v67_v2 = vld [vmem:[#allocation5] sm:$0xff]  ;;  %295 = vmatprep.subr.mxu0 %v68_v0  ;;  %302 = vmatprep.subr.mxu1 %v159_v1  ;;  %v158_v3 = vld [vmem:[#allocation7] sm:$0xff]  ;;  %v66_v5 = vld [vmem:[#allocation2 + $0x8] sm:$0xff]  ;;  %s429_s15 = smov [#allocation8]   ;;  %s430_s17 = smov [#allocation9]  }
  0x28   :  { %v65_v4 = vld [vmem:[#allocation2] sm:$0xff]  ;;  %296 = vmatpush3.msra.mxu0 %v68_v0  ;;  %303 = vmatpush3.msra.mxu1 %v159_v1  ;;  %s252_s16 = sshll.u32 %s429_s15, 4  ;;  %s264_s18 = sshll.u32 %s430_s17, 4  ;;  %s253_s16 = int_to_ptr.vmem [resolvable:$true] %s252_s16  ;;  %s265_s18 = int_to_ptr.vmem [resolvable:$true] %s264_s18 }
  0x29   :  { %297 = vmatprep.subr.mxu0 %v67_v2  ;;  %304 = vmatprep.subr.mxu1 %v158_v3  ;;  %v281_v6 = vld [vmem:[%s508_s2] ss:$0 sm:$0xff]  ;;  %s376_s2 = scalar_lea.vmem %s253_s16, 256  ;;  %p381_p2 = scmp.lt.s32.totalorder %s253_s16, %s253_s16 }
  0x2a   :  { %298 = vmatpush3.msra.mxu0 %v67_v2  ;;  %299 = vmatprep.mubr.msk.f32.mxu0 %vm76_vm0, %v65_v4  ;;  %v284_v7 = vld [vmem:[%s510_s4] ss:$0 sm:$0xff]  ;;  %p377_p1 = scmp.ne.s32.totalorder %s253_s16, %s376_s2  ;;  %p382_p3 = scmp.lt.s32.totalorder %s376_s2, %s376_s2 }
  0x2b   :  { %305 = vmatpush3.msra.mxu1 %v158_v3  ;;  %306 = vmatprep.mubr.msk.f32.mxu1 %vm76_vm0, %v65_v4 }
  0x2c   :  { %300 = vmatmul.mubr.msk.f32.vlgmr.msra.gmra.mxu0 %vm76_vm0, %v66_v5  ;;  %307 = vmatmul.mubr.msk.f32.vlgmr.msra.gmra.mxu1 %vm76_vm0, %v66_v5  ;;  %p383_p4 = por %p382_p3, %p381_p2 }
  0x2e   :  { %p384_p5 = pnand %p383_p4, %p377_p1 }
  0xec   :  { %v301_v8 = vpop.f32.mrf.mxu0  ;;  %v308_v9 = vpop.f32.mrf.mxu1 }
  0xed   :  { %v155_v10 = vadd.f32 %v301_v8, %v281_v6  ;;  %v239_v11 = vadd.f32 %v308_v9, %v284_v7 }
  0xee   :  { %v149_v12 = vpop.f32.mrf.mxu0  ;;  %v233_v13 = vpop.f32.mrf.mxu1 }
  0xef   :  { %v150_v14 = vadd.f32 %v281_v6, %v149_v12  ;;  %v234_v15 = vadd.f32 %v284_v7, %v233_v13  ;;  %244 = vst.msk [vmem:[#allocation8 + $0x8] sm:$0xff] %vm242_vm1, %v155_v10  ;;  %246 = vst.msk [vmem:[#allocation9 + $0x8] sm:$0xff] %vm242_vm1, %v239_v11 }
  0xf1   :  { %243 = vst.msk [vmem:[#allocation8] sm:$0xff] %vm242_vm1, %v150_v14  ;;  %245 = vst.msk [vmem:[#allocation9] sm:$0xff] %vm242_vm1, %v234_v15 }
  0xf2   :  { %387 = shalt.err (!%p384_p5)
}
  0xf3   :  { %258 = dma.vmem_to_hbm [thread:$0]  %s253_s16, 256, %s511_s5, [#allocation4], %s426_s26, %s426_s26, %s427_s27  }
  0xf4   :  { %s396_s20 = scalar_lea.vmem %s265_s18, 256  ;;  %p401_p7 = scmp.lt.s32.totalorder %s265_s18, %s265_s18 }
  0xf5   :  { %p397_p6 = scmp.ne.s32.totalorder %s265_s18, %s396_s20  ;;  %p402_p8 = scmp.lt.s32.totalorder %s396_s20, %s396_s20 }
  0xf7   :  { %p403_p9 = por %p402_p8, %p401_p7 }
  0xf9   :  { %p404_p10 = pnand %p403_p9, %p397_p6 }
  0xfb   :  { %407 = shalt.err (!%p404_p10)
}
  0xfc   :  { %270 = dma.vmem_to_hbm [thread:$0]  %s265_s18, 256, %s512_s6, [#allocation10], %s426_s26, %s426_s26, %s427_s27  }
  0xfd   :  { %420 = dma.done.wait [#allocation4], 256  }
  0xfe   :  { %421 = vsyncadd [#allocation4], 4294967040 }
  0xff   :  { %422 = dma.done.wait [#allocation10], 256  }
 0x100   :  { %423 = vsyncadd [#allocation10], 4294967040 }
 0x101   :  { %277 = vsyncpa [#allocation3], 1 }
 0x102   :  { %278 = vsyncpa [#allocation6], 1 }
 0x103   :  { %279 = vsyncpa [#allocation4], 1 }
 0x104   :  { %280 = vsyncpa [#allocation10], 1 }

</bundles_post_ra>
